<compile_context>
chip_gen: v7x
topology: tpu7x:2x2x1
jax: 0.10.0
libtpu: 0.0.40
codegen_flags: <defaults>
</compile_context>

<pallas_src>
import functools

import jax
import jax.numpy as jnp
from jax.experimental import pallas as pl
from jax.experimental.pallas import tpu as pltpu

LANES = 128
SUBLANES = 8
VREG = SUBLANES * LANES  # 1024 elements = one f32 vreg


def _poisson_sum_kernel(o_ref, t_ref, out_ref, acc_ref, *,
                        bias, valid_rows, tile_rows, acc_rows, need_mask):
    i = pl.program_id(0)
    last = pl.num_programs(0) - 1

    @pl.when(i == 0)
    def _init():
        acc_ref[...] = jnp.zeros_like(acc_ref)

    o = o_ref[...].astype(jnp.float32)
    t = t_ref[...].astype(jnp.float32)
    val = o - t * jnp.log(o + jnp.float32(bias))

    def _fold(v):
        # (tile_rows,128) -> (tile_rows//acc_rows, acc_rows, 128); summing the
        # leading axis is pure VPU vreg adds into the resident accumulator.
        return jnp.sum(v.reshape(tile_rows // acc_rows, acc_rows, LANES), axis=0)

    if need_mask:
        # Only the final (partial) block pays for the mask.
        @pl.when(i != last)
        def _acc_full():
            acc_ref[...] += _fold(val)

        @pl.when(i == last)
        def _acc_masked():
            # Row-only compare: the wrapper guarantees lane alignment, so only
            # whole rows past `valid_rows` are invalid.  jnp.where is a select,
            # so stale/NaN data in the rejected rows is discarded.
            row = jax.lax.broadcasted_iota(jnp.int32, (tile_rows, LANES), 0)
            keep = (i * tile_rows + row) < valid_rows
            acc_ref[...] += _fold(jnp.where(keep, val, jnp.float32(0.0)))
    else:
        acc_ref[...] += _fold(val)

    @pl.when(i == last)
    def _finalize():
        out_ref[...] = jnp.sum(acc_ref[...]).reshape(1, 1)


def poisson_loss(output, target, bias=1e-12, tile_rows=4096):
    assert output.shape == target.shape
    n = int(output.size)
    if n == 0:
        return jnp.float32(jnp.nan)  # mean of an empty tensor

    of = output.reshape(-1)   # reshape of contiguous array: free
    tf = target.reshape(-1)

    # Ragged tail (< 1024 elements): reduce it in plain JAX instead of padding
    # the whole tensor (kills the full-tensor jnp.pad HBM copy).
    rem = n % VREG
    n_aligned = n - rem
    if rem:
        o_t = of[n_aligned:].astype(jnp.float32)
        t_t = tf[n_aligned:].astype(jnp.float32)
        tail_sum = jnp.sum(o_t - t_t * jnp.log(o_t + jnp.float32(bias)))
    else:
        tail_sum = jnp.float32(0.0)

    if n_aligned == 0:
        # Tiny input: everything handled by the JAX tail above.
        return (tail_sum / jnp.float32(n)).astype(jnp.float32)

    m_rows = n_aligned // LANES          # multiple of 8 by construction

    # dtype-aware tile size: same ~8 MiB double-buffered VMEM footprint,
    # fewer grid steps for sub-32-bit inputs (cast to f32 happens in-kernel).
    itemsize = max(jnp.dtype(output.dtype).itemsize,
                   jnp.dtype(target.dtype).itemsize)
    tr = int(tile_rows) * max(1, 4 // int(itemsize))
    tr = min(tr, m_rows)                 # small inputs collapse to grid=(1,)
    tr -= tr % SUBLANES
    tr = max(tr, SUBLANES)

    grid_m = pl.cdiv(m_rows, tr)
    need_mask = (m_rows % tr) != 0       # only a partial final block needs masking
    acc_rows = 32 if tr % 32 == 0 else SUBLANES

    o2 = (of[:n_aligned] if rem else of).reshape(m_rows, LANES)
    t2 = (tf[:n_aligned] if rem else tf).reshape(m_rows, LANES)

    kernel = functools.partial(
        _poisson_sum_kernel, bias=float(bias), valid_rows=m_rows,
        tile_rows=tr, acc_rows=acc_rows, need_mask=need_mask)

    # Only request a bigger scoped-VMEM limit if a user-chosen tile needs it
    # (default tiles stay ~8 MiB, under every generation's default).
    block_bytes = tr * LANES * int(itemsize)
    vmem_need = 4 * block_bytes + acc_rows * LANES * 4 + (64 << 10)
    vmem_limit = None
    if vmem_need > (16 << 20):
        vmem_limit = min(int(vmem_need * 3 // 2), 64 << 20)

    total = pl.pallas_call(
        kernel,
        out_shape=jax.ShapeDtypeStruct((1, 1), jnp.float32),
        grid_spec=pltpu.PrefetchScalarGridSpec(
            num_scalar_prefetch=0,
            grid=(grid_m,),
            in_specs=[
                pl.BlockSpec((tr, LANES), lambda i: (i, 0)),
                pl.BlockSpec((tr, LANES), lambda i: (i, 0)),
            ],
            out_specs=pl.BlockSpec((1, 1), lambda i: (0, 0)),
            scratch_shapes=[pltpu.VMEM((acc_rows, LANES), jnp.float32)],
        ),
        compiler_params=pltpu.CompilerParams(
            dimension_semantics=("arbitrary",),   # reduction axis
            vmem_limit_bytes=vmem_limit,
        ),
    )(o2, t2)

    # mean = (kernel partial sum + JAX tail sum) / true element count.
    return ((total[0, 0] + tail_sum) / jnp.float32(n)).astype(jnp.float32)


def _ref(o, t, bias=1e-12):
    o = o.astype(jnp.float32)
    t = t.astype(jnp.float32)
    return jnp.mean(o - t * jnp.log(o + jnp.float32(bias)))


if __name__ == "__main__":
    key = jax.random.PRNGKey(0)
    k_out, k_tgt = jax.random.split(key)

    # 1) NCHW inputs, same as the PyTorch module would receive (n % 1024 == 0 path).
    shape = (2, 4, 16, 16)
    output = jax.random.uniform(k_out, shape, jnp.float32, minval=0.05, maxval=3.0)
    target = jax.random.poisson(k_tgt, lam=1.5, shape=shape).astype(jnp.float32)
    loss = jax.block_until_ready(poisson_loss(output, target))
    assert jnp.allclose(loss, _ref(output, target), rtol=1e-5, atol=1e-5)

    # 2) Ragged input (JAX-tail path + multi-step grid).
    shape2 = (3, 5, 17, 19)  # 4845 elements: not a multiple of 1024
    o2 = jax.random.uniform(k_out, shape2, jnp.float32, minval=0.05, maxval=3.0)
    t2 = jax.random.poisson(k_tgt, lam=1.5, shape=shape2).astype(jnp.float32)
    loss2 = jax.block_until_ready(poisson_loss(o2, t2, tile_rows=16))
    assert jnp.allclose(loss2, _ref(o2, t2), rtol=1e-5, atol=1e-5)

    # 3) Partial final block (masked-last-step path): 40 rows, tr=16 -> grid=3.
    shape3 = (5, 8, 128)
    o3 = jax.random.uniform(k_out, shape3, jnp.float32, minval=0.05, maxval=3.0)
    t3 = jax.random.poisson(k_tgt, lam=1.5, shape=shape3).astype(jnp.float32)
    loss3 = jax.block_until_ready(poisson_loss(o3, t3, tile_rows=16))
    assert jnp.allclose(loss3, _ref(o3, t3), rtol=1e-5, atol=1e-5)

    # 4) bf16 inputs: narrow dtype streams from HBM, f32 cast happens in-kernel.
    shape4 = (4, 8, 128)
    o4 = jax.random.uniform(k_out, shape4, jnp.float32,
                            minval=0.05, maxval=3.0).astype(jnp.bfloat16)
    t4 = jax.random.poisson(k_tgt, lam=1.5, shape=shape4).astype(jnp.bfloat16)
    loss4 = jax.block_until_ready(poisson_loss(o4, t4))
    assert jnp.allclose(loss4, _ref(o4, t4), rtol=1e-5, atol=1e-5)

    print("KERNEL_OK")
</pallas_src>

<mosaic_0001>
module attributes {stable_mosaic.version = 11 : i64} {
  func.func @_poisson_sum_kernel(%arg0: i32, %arg1: memref<16x128xf32, #tpu.memory_space<vmem>>, %arg2: memref<16x128xf32, #tpu.memory_space<vmem>>, %arg3: memref<1x1xf32, #tpu.memory_space<vmem>>, %arg4: memref<8x128xf32, #tpu.memory_space<vmem>>) attributes {dimension_semantics = [#tpu.dimension_semantics<arbitrary>], iteration_bounds = array<i64: 1>, scalar_prefetch = 0 : i64, scratch_operands = 1 : i64, tpu.core_type = #tpu.core_type<tc>, window_params = [{transform_indices = @transform_0, window_bounds = array<i64: 16, 128>}, {transform_indices = @transform_1, window_bounds = array<i64: 16, 128>}, {pipeline_mode = #tpu.pipeline_mode<synchronous>, transform_indices = @transform_2, window_bounds = array<i64: 1, 1>}]} {
    %c0_i32 = arith.constant 0 : i32
    %0 = arith.cmpi eq, %arg0, %c0_i32 : i32
    %1 = arith.extui %0 : i1 to i32
    %c0_i32_0 = arith.constant 0 : i32
    %2 = arith.cmpi ne, %1, %c0_i32_0 : i32
    scf.if %2 {
      %cst_11 = arith.constant 0.000000e+00 : f32
      %18 = vector.broadcast %cst_11 : f32 to vector<8x128xf32>
      %c0_12 = arith.constant 0 : index
      %c0_13 = arith.constant 0 : index
      %19 = vector.load %arg4[%c0_12, %c0_13] : memref<8x128xf32, #tpu.memory_space<vmem>>, vector<8x128xf32>
      tpu.vector_store %arg4[%c0_12, %c0_13], %18 {strides = array<i32>} : memref<8x128xf32, #tpu.memory_space<vmem>>, vector<8x128xf32>,
    } else {
    }
    %c0 = arith.constant 0 : index
    %c0_1 = arith.constant 0 : index
    %3 = vector.load %arg1[%c0, %c0_1] : memref<16x128xf32, #tpu.memory_space<vmem>>, vector<16x128xf32>
    %c0_2 = arith.constant 0 : index
    %c0_3 = arith.constant 0 : index
    %4 = vector.load %arg2[%c0_2, %c0_3] : memref<16x128xf32, #tpu.memory_space<vmem>>, vector<16x128xf32>
    %cst = arith.constant 9.99999996E-13 : f32
    %5 = vector.broadcast %cst : f32 to vector<16x128xf32>
    %6 = arith.addf %3, %5 : vector<16x128xf32>
    %7 = math.log %6 : vector<16x128xf32>
    %8 = arith.mulf %4, %7 : vector<16x128xf32>
    %9 = arith.subf %3, %8 : vector<16x128xf32>
    %c0_4 = arith.constant 0 : index
    %c0_5 = arith.constant 0 : index
    %10 = vector.load %arg4[%c0_4, %c0_5] : memref<8x128xf32, #tpu.memory_space<vmem>>, vector<8x128xf32>
    %11 = vector.shape_cast %9 : vector<16x128xf32> to vector<2x8x128xf32>
    %cst_6 = arith.constant dense<0.000000e+00> : vector<8x128xf32>
    %12 = vector.multi_reduction <add>, %11, %cst_6 [0] : vector<2x8x128xf32> to vector<8x128xf32>
    %13 = arith.addf %10, %12 : vector<8x128xf32>
    %c0_7 = arith.constant 0 : index
    %c0_8 = arith.constant 0 : index
    %14 = vector.load %arg4[%c0_7, %c0_8] : memref<8x128xf32, #tpu.memory_space<vmem>>, vector<8x128xf32>
    tpu.vector_store %arg4[%c0_7, %c0_8], %13 {strides = array<i32>} : memref<8x128xf32, #tpu.memory_space<vmem>>, vector<8x128xf32>,
    %c0_i32_9 = arith.constant 0 : i32
    %15 = arith.cmpi eq, %arg0, %c0_i32_9 : i32
    %16 = arith.extui %15 : i1 to i32
    %c0_i32_10 = arith.constant 0 : i32
    %17 = arith.cmpi ne, %16, %c0_i32_10 : i32
    scf.if %17 {
      %c0_11 = arith.constant 0 : index
      %c0_12 = arith.constant 0 : index
      %18 = vector.load %arg4[%c0_11, %c0_12] : memref<8x128xf32, #tpu.memory_space<vmem>>, vector<8x128xf32>
      %19 = vector.shape_cast %18 : vector<8x128xf32> to vector<1x8x128xf32>
      %cst_13 = arith.constant dense<0.000000e+00> : vector<1xf32>
      %20 = vector.multi_reduction <add>, %19, %cst_13 [1, 2] : vector<1x8x128xf32> to vector<1xf32>
      %21 = vector.shape_cast %20 : vector<1xf32> to vector<1x1x1xf32>
      %22 = vector.extract %21[0, 0, 0] : f32 from vector<1x1x1xf32>
      %23 = vector.broadcast %22 : f32 to vector<1x1xf32>
      %c0_14 = arith.constant 0 : index
      %c0_15 = arith.constant 0 : index
      %24 = vector.load %arg3[%c0_14, %c0_15] : memref<1x1xf32, #tpu.memory_space<vmem>>, vector<1x1xf32>
      tpu.vector_store %arg3[%c0_14, %c0_15], %23 {strides = array<i32>} : memref<1x1xf32, #tpu.memory_space<vmem>>, vector<1x1xf32>,
    } else {
    }
    return
  }
  func.func @transform_0(%arg0: i32) -> (i32, i32) {
    %c0_i32 = arith.constant 0 : i32
    %c0_i32_0 = arith.constant 0 : i32
    return %arg0, %c0_i32 : i32, i32
  }
  func.func @transform_1(%arg0: i32) -> (i32, i32) {
    %c0_i32 = arith.constant 0 : i32
    %c0_i32_0 = arith.constant 0 : i32
    return %arg0, %c0_i32 : i32, i32
  }
  func.func @transform_2(%arg0: i32) -> (i32, i32) {
    %c0_i32 = arith.constant 0 : i32
    %c0_i32_0 = arith.constant 0 : i32
    %c0_i32_1 = arith.constant 0 : i32
    return %c0_i32, %c0_i32_0 : i32, i32
  }
}

</mosaic_0001>

<bundles_post_ra>
// kernel: tpu_custom_call.1
= control target key start
LH: loop header
LB: loop body
LE: loop exit
PB: predicated region body
PF: predicated region fallthrough
CT: control target
= control target key end

     0   :  { %7 = vsyncpa [#allocation4], 0  ;;  %s234_s0 = inlined_call_operand.hbm [shape: f32[16,128], index: 0, kind: input, shape index: {}]   ;;  %s235_s1 = inlined_call_operand.hbm [shape: f32[16,128], index: 1, kind: input, shape index: {}]   ;;  %s236_s2 = inlined_call_operand.hbm [shape: f32[1,1], index: 2, kind: output, shape index: {}]  }
   0x1   :  { %8 = vsyncpa [#allocation7], 0 }
   0x2   :  { %9 = vsyncpa [#allocation5], 0  ;;  %s178_s9 = smov [#allocation3]   ;;  %s106_s13 = scalar_lea.hbm %s234_s0, 256 }
   0x3   :  { %s15_s10 = sshll.u32 %s178_s9, 4  ;;  %p107_p0 = scmp.ne.s32.totalorder %s234_s0, %s106_s13  ;;  %s16_s10 = int_to_ptr.vmem [resolvable:$true] %s15_s10 }
   0x4   :  { %p110_p1 = scmp.lt.u32.totalorder %s106_s13, %s234_s0 }
   0x6   :  { %p112_p2 = pnand %p110_p1, %p107_p0 }
   0x8   :  { %115 = shalt.err (!%p112_p2)
}
   0x9   :  { %s116_s18 = scalar_lea.vmem %s16_s10, 256  ;;  %p121_p4 = scmp.lt.s32.totalorder %s16_s10, %s16_s10 }
   0xa   :  { %p117_p3 = scmp.ne.s32.totalorder %s16_s10, %s116_s18  ;;  %p122_p5 = scmp.lt.s32.totalorder %s116_s18, %s116_s18 }
   0xc   :  { %p123_p6 = por %p122_p5, %p121_p4 }
   0xe   :  { %p124_p7 = pnand %p123_p6, %p117_p3 }
  0x10   :  { %127 = shalt.err (!%p124_p7)
}
  0x11   :  { %s179_s19 = smov 128   ;;  %s180_s20 = smov 8  }
  0x12   :  { %21 = dma.hbm_to_vmem [thread:$0]  %s234_s0, 256, %s16_s10, [#allocation4], %s179_s19, %s179_s19, %s180_s20  }
  0x13   :  { %s181_s23 = smov [#allocation6]   ;;  %s128_s27 = scalar_lea.hbm %s235_s1, 256 }
  0x14   :  { %s27_s24 = sshll.u32 %s181_s23, 4  ;;  %p129_p8 = scmp.ne.s32.totalorder %s235_s1, %s128_s27  ;;  %s28_s24 = int_to_ptr.vmem [resolvable:$true] %s27_s24 }
  0x15   :  { %p132_p9 = scmp.lt.u32.totalorder %s128_s27, %s235_s1 }
  0x17   :  { %p134_p10 = pnand %p132_p9, %p129_p8 }
  0x19   :  { %137 = shalt.err (!%p134_p10)
}
  0x1a   :  { %s138_s4 = scalar_lea.vmem %s28_s24, 256  ;;  %p143_p12 = scmp.lt.s32.totalorder %s28_s24, %s28_s24 }
  0x1b   :  { %p139_p11 = scmp.ne.s32.totalorder %s28_s24, %s138_s4  ;;  %p144_p13 = scmp.lt.s32.totalorder %s138_s4, %s138_s4 }
  0x1d   :  { %p145_p0 = por %p144_p13, %p143_p12 }
  0x1f   :  { %p146_p1 = pnand %p145_p0, %p139_p11 }
  0x21   :  { %149 = shalt.err (!%p146_p1)
}
  0x22   :  { %33 = dma.hbm_to_vmem [thread:$0]  %s235_s1, 256, %s28_s24, [#allocation7], %s179_s19, %s179_s19, %s180_s20  }
  0x23   :  { %172 = dma.done.wait [#allocation4], 256  }
  0x24   :  { %173 = vsyncadd [#allocation4], 4294967040 }
  0x25   :  { %174 = dma.done.wait [#allocation7], 256  }
  0x26   :  { %175 = vsyncadd [#allocation7], 4294967040  ;;  %v45_v0 = vld [vmem:[#allocation3] sm:$0xff]  ;;  %v46_v1 = vld [vmem:[#allocation3 + $0x8] sm:$0xff]  ;;  %s182_s1 = smov [#allocation8]   ;;  %vm77_vm0 = vcmask 0  }
  0x27   :  { %v49_v2 = vadd.f32 1e-12, %v45_v0  ;;  %v50_v3 = vadd.f32 1e-12, %v46_v1  ;;  %v47_v5 = vld [vmem:[#allocation6] sm:$0xff]  ;;  %v48_v7 = vld [vmem:[#allocation6 + $0x8] sm:$0xff] }
  0x28   :  { %s85_s6 = sshll.u32 %s182_s1, 4  ;;  %s86_s6 = int_to_ptr.vmem [resolvable:$true] %s85_s6 }
  0x29   :  { %102 = vlog2.f32 %v49_v2  ;;  %s150_s8 = scalar_lea.vmem %s86_s6, 16  ;;  %s154_s9 = scalar_lea.vmem %s86_s6, 32 }
  0x2a   :  { %104 = vlog2.f32 %v50_v3  ;;  %p151_p2 = scmp.ne.s32.totalorder %s86_s6, %s150_s8  ;;  %p155_p3 = scmp.lt.s32.totalorder %s86_s6, %s86_s6 }
  0x2b   :  { %p156_p4 = scmp.lt.s32.totalorder %s154_s9, %s150_s8 }
  0x2d   :  { %p157_p5 = por %p156_p4, %p155_p3 }
  0x2f   :  { %p158_p6 = pnand %p157_p5, %p151_p2 }
  0x33   :  { %v103_v4 = vpop.eup %102 }
  0x34   :  { %v105_v6 = vpop.eup %104  ;;  %v52_v8 = vmul.f32 0.6931472, %v103_v4 }
  0x35   :  { %v54_v9 = vmul.f32 0.6931472, %v105_v6 }
  0x36   :  { %v55_v10 = vmul.f32 %v52_v8, %v47_v5 }
  0x37   :  { %v56_v11 = vmul.f32 %v54_v9, %v48_v7 }
  0x38   :  { %v57_v12 = vsub.f32 %v45_v0, %v55_v10 }
  0x39   :  { %v58_v13 = vsub.f32 %v46_v1, %v56_v11 }
  0x3b   :  { %v60_v14 = vadd.f32 %v58_v13, %v57_v12 }
  0x3d   :  { %67 = vadd.xlane.f32.xlu0 %v60_v14 }
  0xca   :  { %v68_v15 = vpop.xlane.xlu0 %67 }
  0xcb   :  { %v69_v16 = vrot.slane %v68_v15, 4 }
  0xcd   :  { %v70_v17 = vadd.f32 %v69_v16, %v68_v15 }
  0xcf   :  { %v71_v18 = vrot.slane %v70_v17, 2 }
  0xd1   :  { %v72_v19 = vadd.f32 %v71_v18, %v70_v17 }
  0xd3   :  { %v73_v20 = vrot.slane %v72_v19, 1 }
  0xd5   :  { %v74_v21 = vadd.f32 %v73_v20, %v72_v19 }
  0xd7   :  { %95 = vpush %v74_v21 }
 0x108   :  { %s96_s7 = spop %95 }
 0x109   :  { %v76_v22 = vstv %s96_s7 }
 0x10a   :  { %78 = vst.msk [vmem:[#allocation8] sm:$0x1] %vm77_vm0, %v76_v22 }
 0x10b   :  { %161 = shalt.err (!%p158_p6)
}
 0x10c   :  { %s162_s12 = scalar_lea.hbm %s236_s2, 16 }
 0x10d   :  { %p163_p7 = scmp.ne.s32.totalorder %s236_s2, %s162_s12  ;;  %p166_p8 = scmp.lt.u32.totalorder %s162_s12, %s236_s2 }
 0x10f   :  { %p168_p9 = pnand %p166_p8, %p163_p7 }
 0x111   :  { %171 = shalt.err (!%p168_p9)
}
 0x112   :  { %88 = dma.vmem_to_hbm [thread:$0]  %s86_s6, 16, %s236_s2, [#allocation5]  }
 0x113   :  { %176 = dma.done.wait [#allocation5], 16  }
 0x114   :  { %177 = vsyncadd [#allocation5], 4294967280 }
 0x115   :  { %92 = vsyncpa [#allocation4], 1 }
 0x116   :  { %93 = vsyncpa [#allocation7], 1 }
 0x117   :  { %94 = vsyncpa [#allocation5], 1 }

</bundles_post_ra>
